<compile_context>
chip_gen: v7x
topology: tpu7x:2x2x1
jax: 0.10.0
libtpu: 0.0.40
codegen_flags: <defaults>
</compile_context>

<pallas_src>
import math
import functools

import jax
import jax.numpy as jnp
from jax.experimental import pallas as pl
from jax.experimental.pallas import tpu as pltpu


# Default tile targets; adapted to the actual problem size by _pick_tile.
_TM = 256   # row (token) tile
_TN = 256   # output-feature tile (dense)
_TK = 512   # contraction tile (d_model)
_TQ = 256   # query-row tile (attention)


def _pick_tile(dim, target, align):
    """Largest divisor of `dim` that is <= target and a multiple of `align`;
    falls back to `dim` (full extent, always legal) if no such divisor exists."""
    if dim <= target:
        return dim
    for cand in range(min(target, dim), align - 1, -1):
        if dim % cand == 0 and cand % align == 0:
            return cand
    return dim


# ----------------------------------------------------------------------------
# Q/K/V projection: (N, Din) @ per-head weights -> head-major (H, N, depth)
# ----------------------------------------------------------------------------
def _proj_heads_kernel(x_ref, w_ref, b_ref, o_ref, acc_ref):
    kk = pl.program_id(2)

    @pl.when(kk == 0)
    def _init():
        acc_ref[...] = jnp.zeros_like(acc_ref)

    acc_ref[...] += jnp.dot(x_ref[...], w_ref[...],
                            preferred_element_type=jnp.float32)

    @pl.when(kk == pl.num_programs(2) - 1)
    def _finalize():
        o_ref[...] = (acc_ref[...] + b_ref[...]).astype(o_ref.dtype)


def project_to_heads(x2d, w, b, num_heads):
    """x2d: (N, Din); w: (Dout, Din) torch layout; b: (Dout,).
    Returns (H, N, depth) with depth = Dout // num_heads."""
    n, din = x2d.shape
    dout = w.shape[0]
    depth = dout // num_heads

    # One-time weight re-layout (weights only, not activations): per-head W^T.
    w_h = w.reshape(num_heads, depth, din).transpose(0, 2, 1)  # (H, Din, depth)
    b_h = b.reshape(num_heads, 1, depth)                       # (H, 1, depth)

    tm = _pick_tile(n, _TM, 8)
    tk = _pick_tile(din, _TK, 128)

    return pl.pallas_call(
        _proj_heads_kernel,
        out_shape=jax.ShapeDtypeStruct((num_heads, n, depth), x2d.dtype),
        grid_spec=pltpu.PrefetchScalarGridSpec(
            num_scalar_prefetch=0,
            grid=(n // tm, num_heads, din // tk),
            in_specs=[
                pl.BlockSpec((tm, tk), lambda i, h, kk: (i, kk)),
                pl.BlockSpec((None, tk, depth), lambda i, h, kk: (h, kk, 0)),
                pl.BlockSpec((None, 1, depth), lambda i, h, kk: (h, 0, 0)),
            ],
            out_specs=pl.BlockSpec((None, tm, depth), lambda i, h, kk: (h, i, 0)),
            scratch_shapes=[pltpu.VMEM((tm, depth), jnp.float32)],
        ),
        compiler_params=pltpu.CompilerParams(
            dimension_semantics=("parallel", "parallel", "arbitrary"),
        ),
    )(x2d, w_h, b_h)


# ----------------------------------------------------------------------------
# Output projection: head-major (H, N, depth) -> (N, Dout), contracting heads
# ----------------------------------------------------------------------------
def _dense_kernel(a_ref, w_ref, b_ref, o_ref, acc_ref):
    h = pl.program_id(2)

    @pl.when(h == 0)
    def _init():
        acc_ref[...] = jnp.zeros_like(acc_ref)

    acc_ref[...] += jnp.dot(a_ref[...], w_ref[...],
                            preferred_element_type=jnp.float32)

    @pl.when(h == pl.num_programs(2) - 1)
    def _finalize():
        o_ref[...] = (acc_ref[...] + b_ref[...]).astype(o_ref.dtype)


def dense_from_heads(a_heads, w, b):
    """a_heads: (H, N, depth); w: (Dout, Din=H*depth) torch layout; b: (Dout,).
    Computes concat_h(a_heads) @ W^T + b without materializing the merge."""
    num_heads, n, depth = a_heads.shape
    dout = w.shape[0]

    w_h = w.T.reshape(num_heads, depth, dout)  # rows h*depth+d of W^T, per head
    b2d = b.reshape(1, dout)

    tm = _pick_tile(n, _TM, 8)
    tn = _pick_tile(dout, _TN, 128)

    return pl.pallas_call(
        _dense_kernel,
        out_shape=jax.ShapeDtypeStruct((n, dout), a_heads.dtype),
        grid_spec=pltpu.PrefetchScalarGridSpec(
            num_scalar_prefetch=0,
            grid=(n // tm, dout // tn, num_heads),
            in_specs=[
                pl.BlockSpec((None, tm, depth), lambda i, j, h: (h, i, 0)),
                pl.BlockSpec((None, depth, tn), lambda i, j, h: (h, 0, j)),
                pl.BlockSpec((1, tn), lambda i, j, h: (0, j)),
            ],
            out_specs=pl.BlockSpec((tm, tn), lambda i, j, h: (i, j)),
            scratch_shapes=[pltpu.VMEM((tm, tn), jnp.float32)],
        ),
        compiler_params=pltpu.CompilerParams(
            dimension_semantics=("parallel", "parallel", "arbitrary"),
        ),
    )(a_heads, w_h, b2d)


# ----------------------------------------------------------------------------
# Scaled dot-product attention, q-row tiled, one (head, batch, q-tile) per step
# ----------------------------------------------------------------------------
def _attn_kernel(q_ref, k_ref, v_ref, o_ref, w_ref, *, scale):
    # q: (tq, depth), k/v: (Sk, depth)
    q = q_ref[...] * scale                         # fold 1/sqrt(dk) into q
    # QK^T via dot_general contracting depth of both operands (no .T copy).
    logits = jax.lax.dot_general(
        q, k_ref[...], (((1,), (1,)), ((), ())),
        preferred_element_type=jnp.float32)        # (tq, Sk) f32

    m = jnp.max(logits, axis=-1, keepdims=True)
    e = jnp.exp(logits - m)
    denom = jnp.sum(e, axis=-1, keepdims=True)
    # EUP reciprocal + one Newton step: keeps the divide off the VALU but ~f32 exact.
    r = pl.reciprocal(denom, approx=True)
    r = r * (2.0 - denom * r)
    p = e * r                                      # (tq, Sk) softmax weights

    out = jnp.dot(p.astype(v_ref.dtype), v_ref[...],
                  preferred_element_type=jnp.float32)
    o_ref[...] = out.astype(o_ref.dtype)
    w_ref[...] = p.astype(w_ref.dtype)


def scaled_dot_product_attention(qh, kh, vh):
    """qh: (H, B, Sq, depth); kh, vh: (H, B, Sk, depth).
    Returns (out (H, B, Sq, depth), attn_weights (B, H, Sq, Sk))."""
    H, B, Sq, depth = qh.shape
    Sk = kh.shape[2]
    tq = _pick_tile(Sq, _TQ, 8)
    scale = 1.0 / math.sqrt(depth)
    dt = qh.dtype
    isz = dt.itemsize

    cost = pl.CostEstimate(
        flops=2 * 2 * H * B * Sq * Sk * depth,              # QK^T + PV
        transcendentals=H * B * Sq * Sk,                    # exp
        bytes_accessed=isz * (H * B * (Sq + 2 * Sk) * depth
                              + H * B * Sq * depth + H * B * Sq * Sk),
    )

    kernel = functools.partial(_attn_kernel, scale=scale)
    out, attn = pl.pallas_call(
        kernel,
        out_shape=(
            jax.ShapeDtypeStruct((H, B, Sq, depth), dt),
            jax.ShapeDtypeStruct((B, H, Sq, Sk), dt),       # weights in input dtype
        ),
        grid_spec=pltpu.PrefetchScalarGridSpec(
            num_scalar_prefetch=0,
            grid=(H, B, Sq // tq),
            in_specs=[
                pl.BlockSpec((None, None, tq, depth), lambda h, b, qi: (h, b, qi, 0)),
                pl.BlockSpec((None, None, Sk, depth), lambda h, b, qi: (h, b, 0, 0)),
                pl.BlockSpec((None, None, Sk, depth), lambda h, b, qi: (h, b, 0, 0)),
            ],
            out_specs=[
                pl.BlockSpec((None, None, tq, depth), lambda h, b, qi: (h, b, qi, 0)),
                pl.BlockSpec((None, None, tq, Sk), lambda h, b, qi: (b, h, qi, 0)),
            ],
        ),
        compiler_params=pltpu.CompilerParams(
            dimension_semantics=("parallel", "parallel", "arbitrary"),
            vmem_limit_bytes=64 * 1024 * 1024,
        ),
        cost_estimate=cost,
    )(qh, kh, vh)
    return out, attn


# ----------------------------------------------------------------------------
# MultiHeadAttention module (parameters + forward glue)
# ----------------------------------------------------------------------------
def init_mha_params(key, d_model):
    """Deterministic init mimicking nn.Linear default (uniform +-1/sqrt(fan_in))."""
    keys = jax.random.split(key, 8)
    bound = 1.0 / math.sqrt(d_model)

    def lin(kw, kb):
        w = jax.random.uniform(kw, (d_model, d_model), jnp.float32, -bound, bound)
        b = jax.random.uniform(kb, (d_model,), jnp.float32, -bound, bound)
        return w, b

    return {
        "wq": lin(keys[0], keys[1]),
        "wk": lin(keys[2], keys[3]),
        "wv": lin(keys[4], keys[5]),
        "dense": lin(keys[6], keys[7]),
    }


def multi_head_attention(params, v, k, q, num_heads):
    """v, k, q: (B, S, d_model). Returns (output (B,Sq,d_model), attn (B,H,Sq,Sk))."""
    B, Sq, D = q.shape
    Sk = k.shape[1]
    assert D % num_heads == 0
    depth = D // num_heads

    # Projections write head-major (H, B*S, depth) directly -> no split_heads.
    qh = project_to_heads(q.reshape(B * Sq, D), *params["wq"], num_heads)
    kh = project_to_heads(k.reshape(B * Sk, D), *params["wk"], num_heads)
    vh = project_to_heads(v.reshape(B * Sk, D), *params["wv"], num_heads)

    # (H, B*S, depth) -> (H, B, S, depth): contiguous reshape, no transpose.
    qh = qh.reshape(num_heads, B, Sq, depth)
    kh = kh.reshape(num_heads, B, Sk, depth)
    vh = vh.reshape(num_heads, B, Sk, depth)

    attn_out, attn_w = scaled_dot_product_attention(qh, kh, vh)

    # Dense contracts over the head axis of the head-major layout -> no merge.
    out = dense_from_heads(attn_out.reshape(num_heads, B * Sq, depth),
                           *params["dense"])
    return out.reshape(B, Sq, D), attn_w


# ----------------------------------------------------------------------------
# Pure-JAX reference for sanity check
# ----------------------------------------------------------------------------
def _reference(params, v, k, q, num_heads):
    B, Sq, D = q.shape
    Sk = k.shape[1]
    depth = D // num_heads

    def lin(x, wb):
        w, b = wb
        return x @ w.T + b

    qp = lin(q, params["wq"]).reshape(B, Sq, num_heads, depth).transpose(0, 2, 1, 3)
    kp = lin(k, params["wk"]).reshape(B, Sk, num_heads, depth).transpose(0, 2, 1, 3)
    vp = lin(v, params["wv"]).reshape(B, Sk, num_heads, depth).transpose(0, 2, 1, 3)

    logits = jnp.einsum("bhqd,bhkd->bhqk", qp, kp) / math.sqrt(depth)
    attn = jax.nn.softmax(logits, axis=-1)
    out = jnp.einsum("bhqk,bhkd->bhqd", attn, vp)
    merged = out.transpose(0, 2, 1, 3).reshape(B, Sq, D)
    return lin(merged, params["dense"]), attn


if __name__ == "__main__":
    d_model = 32
    num_heads = 4
    batch = 2
    seq = 8

    key = jax.random.PRNGKey(0)
    kp, kq, kk, kv = jax.random.split(key, 4)

    params = init_mha_params(kp, d_model)
    q = jax.random.normal(kq, (batch, seq, d_model), jnp.float32)
    k = jax.random.normal(kk, (batch, seq, d_model), jnp.float32)
    v = jax.random.normal(kv, (batch, seq, d_model), jnp.float32)

    out, attn_w = multi_head_attention(params, v, k, q, num_heads)
    out = jax.block_until_ready(out)
    attn_w = jax.block_until_ready(attn_w)

    ref_out, ref_attn = _reference(params, v, k, q, num_heads)
    assert out.shape == (batch, seq, d_model)
    assert attn_w.shape == (batch, num_heads, seq, seq)
    # Tolerance covers the EUP approximate reciprocal (+ Newton step) and the
    # tiled f32 accumulation order.
    assert jnp.allclose(out, ref_out, atol=1e-3, rtol=1e-3)
    assert jnp.allclose(attn_w, ref_attn, atol=1e-3, rtol=1e-3)

    print("KERNEL_OK")
</pallas_src>

<mosaic_0001>
module attributes {stable_mosaic.version = 11 : i64} {
  func.func @_proj_heads_kernel(%arg0: i32, %arg1: i32, %arg2: i32, %arg3: memref<16x32xf32, #tpu.memory_space<vmem>>, %arg4: memref<1x32x8xf32, #tpu.memory_space<vmem>>, %arg5: memref<1x1x8xf32, #tpu.memory_space<vmem>>, %arg6: memref<1x16x8xf32, #tpu.memory_space<vmem>>, %arg7: memref<16x8xf32, #tpu.memory_space<vmem>>) attributes {dimension_semantics = [#tpu.dimension_semantics<parallel>, #tpu.dimension_semantics<parallel>, #tpu.dimension_semantics<arbitrary>], iteration_bounds = array<i64: 1, 4, 1>, scalar_prefetch = 0 : i64, scratch_operands = 1 : i64, tpu.core_type = #tpu.core_type<tc>, window_params = [{transform_indices = @transform_0, window_bounds = array<i64: 16, 32>}, {transform_indices = @transform_1, window_bounds = array<i64: 1, 32, 8>}, {transform_indices = @transform_2, window_bounds = array<i64: 1, 1, 8>}, {transform_indices = @transform_3, window_bounds = array<i64: 1, 16, 8>}]} {
    %c0_i32 = arith.constant 0 : i32
    %0 = arith.cmpi eq, %arg2, %c0_i32 : i32
    %1 = arith.extui %0 : i1 to i32
    %c0_i32_0 = arith.constant 0 : i32
    %2 = arith.cmpi ne, %1, %c0_i32_0 : i32
    scf.if %2 {
      %cst_11 = arith.constant 0.000000e+00 : f32
      %13 = vector.broadcast %cst_11 : f32 to vector<16x8xf32>
      %c0_12 = arith.constant 0 : index
      %c0_13 = arith.constant 0 : index
      %14 = vector.load %arg7[%c0_12, %c0_13] : memref<16x8xf32, #tpu.memory_space<vmem>>, vector<16x8xf32>
      tpu.vector_store %arg7[%c0_12, %c0_13], %13 {strides = array<i32>} : memref<16x8xf32, #tpu.memory_space<vmem>>, vector<16x8xf32>,
    } else {
    }
    %c0 = arith.constant 0 : index
    %c0_1 = arith.constant 0 : index
    %3 = vector.load %arg7[%c0, %c0_1] : memref<16x8xf32, #tpu.memory_space<vmem>>, vector<16x8xf32>
    %c0_2 = arith.constant 0 : index
    %c0_3 = arith.constant 0 : index
    %4 = vector.load %arg3[%c0_2, %c0_3] : memref<16x32xf32, #tpu.memory_space<vmem>>, vector<16x32xf32>
    %c0_4 = arith.constant 0 : index
    %c0_5 = arith.constant 0 : index
    %c0_6 = arith.constant 0 : index
    %5 = vector.load %arg4[%c0_4, %c0_5, %c0_6] : memref<1x32x8xf32, #tpu.memory_space<vmem>>, vector<1x32x8xf32>
    %6 = vector.shape_cast %5 : vector<1x32x8xf32> to vector<32x8xf32>
    %cst = arith.constant dense<0.000000e+00> : vector<16x8xf32>
    %7 = tpu.matmul %4, %6, %cst {dimension_numbers = #tpu.dot_dimension_numbers<[1], [0], [0], [1], [0, 0, 1, 1], [], []>} : vector<16x32xf32>, vector<32x8xf32>, vector<16x8xf32> -> vector<16x8xf32>
    %8 = arith.addf %3, %7 : vector<16x8xf32>
    %c0_7 = arith.constant 0 : index
    %c0_8 = arith.constant 0 : index
    %9 = vector.load %arg7[%c0_7, %c0_8] : memref<16x8xf32, #tpu.memory_space<vmem>>, vector<16x8xf32>
    tpu.vector_store %arg7[%c0_7, %c0_8], %8 {strides = array<i32>} : memref<16x8xf32, #tpu.memory_space<vmem>>, vector<16x8xf32>,
    %c0_i32_9 = arith.constant 0 : i32
    %10 = arith.cmpi eq, %arg2, %c0_i32_9 : i32
    %11 = arith.extui %10 : i1 to i32
    %c0_i32_10 = arith.constant 0 : i32
    %12 = arith.cmpi ne, %11, %c0_i32_10 : i32
    scf.if %12 {
      %c0_11 = arith.constant 0 : index
      %c0_12 = arith.constant 0 : index
      %13 = vector.load %arg7[%c0_11, %c0_12] : memref<16x8xf32, #tpu.memory_space<vmem>>, vector<16x8xf32>
      %c0_13 = arith.constant 0 : index
      %c0_14 = arith.constant 0 : index
      %c0_15 = arith.constant 0 : index
      %14 = vector.load %arg5[%c0_13, %c0_14, %c0_15] : memref<1x1x8xf32, #tpu.memory_space<vmem>>, vector<1x1x8xf32>
      %15 = vector.shape_cast %14 : vector<1x1x8xf32> to vector<1x8xf32>
      %16 = vector.broadcast %15 : vector<1x8xf32> to vector<16x8xf32>
      %17 = arith.addf %13, %16 : vector<16x8xf32>
      %c0_16 = arith.constant 0 : index
      %c0_17 = arith.constant 0 : index
      %c0_18 = arith.constant 0 : index
      %18 = vector.load %arg6[%c0_16, %c0_17, %c0_18] : memref<1x16x8xf32, #tpu.memory_space<vmem>>, vector<1x16x8xf32>
      %19 = vector.shape_cast %18 : vector<1x16x8xf32> to vector<16x8xf32>
      %20 = vector.shape_cast %17 : vector<16x8xf32> to vector<1x16x8xf32>
      tpu.vector_store %arg6[%c0_16, %c0_17, %c0_18], %20 {strides = array<i32>} : memref<1x16x8xf32, #tpu.memory_space<vmem>>, vector<1x16x8xf32>,
    } else {
    }
    return
  }
  func.func @transform_0(%arg0: i32, %arg1: i32, %arg2: i32) -> (i32, i32) {
    %c0_i32 = arith.constant 0 : i32
    return %arg0, %arg2 : i32, i32
  }
  func.func @transform_1(%arg0: i32, %arg1: i32, %arg2: i32) -> (i32, i32, i32) {
    %c0_i32 = arith.constant 0 : i32
    %c0_i32_0 = arith.constant 0 : i32
    return %arg1, %arg2, %c0_i32 : i32, i32, i32
  }
  func.func @transform_2(%arg0: i32, %arg1: i32, %arg2: i32) -> (i32, i32, i32) {
    %c0_i32 = arith.constant 0 : i32
    %c0_i32_0 = arith.constant 0 : i32
    %c0_i32_1 = arith.constant 0 : i32
    return %arg1, %c0_i32, %c0_i32_0 : i32, i32, i32
  }
  func.func @transform_3(%arg0: i32, %arg1: i32, %arg2: i32) -> (i32, i32, i32) {
    %c0_i32 = arith.constant 0 : i32
    %c0_i32_0 = arith.constant 0 : i32
    return %arg1, %arg0, %c0_i32 : i32, i32, i32
  }
}

</mosaic_0001>

<bundles_post_ra>
// kernel: tpu_custom_call.1
= control target key start
LH: loop header
LB: loop body
LE: loop exit
PB: predicated region body
PF: predicated region fallthrough
CT: control target
= control target key end

     0   :  { %s611_s12 = smov 0   ;;  %s613_s13 = smov 0   ;;  %s661_s0 = inlined_call_operand.vmem [shape: f32[16,32], index: 0, kind: input, shape index: {}]   ;;  %s662_s1 = inlined_call_operand.vmem [shape: f32[4,32,8], index: 1, kind: input, shape index: {}]   ;;  %s663_s2 = inlined_call_operand.vmem [shape: f32[4,1,8], index: 2, kind: input, shape index: {}]   ;;  %s664_s3 = inlined_call_operand.vmem [shape: f32[4,16,8], index: 3, kind: output, shape index: {}]  }
   0x1   :  { %s615_s14 = smov 0  }
   0x2 LB: > { %s28_s15 = sadd.s32 1, %s584_s13  ;;  %p504_p0 = scmp.ge.s32.totalorder %s588_s14, 1  ;;  %s588_s14 = sphi %s615_s14, %s13_s14   ;;  %s584_s13 = sphi %s613_s13, %s666_s13   ;;  %s580_s12 = sphi %s611_s12, %s665_s12  }
   0x3   : > { %p30_p1 = scmp.ge.s32.totalorder %s28_s15, 4  ;;  %p189_p2 = scmp.lt.s32.totalorder %s588_s14, 5 }
   0x5   : > { %s668_s15 = smov (%p30_p1, %s28_s15), 0  ;;  %p190_p3 = pnand %p504_p0, %p189_p2 }
   0x6   : > { %p242_p4 = scmp.lt.s32.totalorder (!%p190_p3), %s580_s12, 3  ;;  %v273_v0 = vld [vmem:[%s661_s0] sm:$0xff] (!%p190_p3)  ;;  %vm279_vm0 = vcmask (!%p190_p3), 261120   ;;  %vm268_vm1 = vcmask (!%p190_p3), 64512   ;;  %v590_v1 = vmov (!%p190_p3), 0.0   ;;  %v274_v8 = vld [vmem:[%s661_s0 + $0x8] sm:$0xff] (!%p190_p3) }
   0x7   : > { %193 = sbr.rel (%p190_p3) target bundleno = 254 (0xfe), region = 32  ;;  %530 = vmatprep.mubr.msk.f32.mxu0 (!%p190_p3), %vm279_vm0, %v273_v0  ;;  %270 = vst.msk [vmem:[#allocation2 + $0x8] sm:$0xff] (!%p190_p3), %vm268_vm1, %v590_v1  ;;  %269 = vst.msk [vmem:[#allocation2] sm:$0xff] (!%p190_p3), %vm268_vm1, %v590_v1 }
   0xe   : > { %s670_s12 = smov (!%p242_p4, %s580_s12), 3  ;;  %v272_v9 = vld [vmem:[#allocation2 + $0x8] sm:$0xff]  ;;  %v271_v10 = vld [vmem:[#allocation2] sm:$0xff] }
   0xf   : > { %s514_s18 = sshll.u32 %s670_s12, 5  ;;  %s253_s26 = scalar_lea.vmem %s663_s2, %s670_s12 }
  0x10   : > { %s249_s21 = scalar_lea.vmem %s662_s1, %s514_s18  ;;  %s515_s27 = sshll.u32 %s670_s12, 4  ;;  %v511_v15 = vld [vmem:[%s253_s26] ss:$0 sm:$0xff] }
  0x11   : > { %v275_v2 = vld [vmem:[%s249_s21] sm:$0xff]  ;;  %v276_v3 = vld [vmem:[%s249_s21 + $0x8] sm:$0xff]  ;;  %v277_v4 = vld [vmem:[%s249_s21 + $0x10] sm:$0xff]  ;;  %s262_s30 = scalar_lea.vmem %s664_s3, %s515_s27 }
  0x12   : > { %v533_v5 = vpack.c.bf16 %v276_v3, %v275_v2  ;;  %v278_v6 = vld [vmem:[%s249_s21 + $0x18] sm:$0xff] }
  0x13   : > { %v537_v7 = vpack.c.bf16 %v278_v6, %v277_v4 }
  0x14   : > { %534 = vmatprep.subr.bf16.mxu0 %v533_v5 }
  0x15   : > { %536 = vmatpush3.bf16.msra.mxu0 %v533_v5 }
  0x16   : > { %538 = vmatprep.subr.bf16.mxu0 %v537_v7 }
  0x19   : > { %540 = vmatpush3.bf16.msra.mxu0 %v537_v7 }
  0x1c   : > { %531 = vmatmul.mubr.msk.f32.vlgmr.msra.gmra.mrb[0].mxu0 %vm279_vm0, %v274_v8 }
  0xef   : > { %v532_v11 = vpop.f32.mrb[0].mxu0 }
  0xf0   : > { %v362_v12 = vadd.f32 %v532_v11, %v272_v9  ;;  %v352_v13 = vpop.f32.mrb[1].mxu0 }
  0xf1   : > { %v361_v14 = vadd.f32 %v352_v13, %v271_v10 }
  0xf2   : > { %365 = vst.msk [vmem:[#allocation2 + $0x8] sm:$0xff] %vm268_vm1, %v362_v12 }
  0xf3   : > { %364 = vst.msk [vmem:[#allocation2] sm:$0xff] %vm268_vm1, %v361_v14 }
  0xf9   : > { %v370_v16 = vld [vmem:[#allocation2 + $0x8] sm:$0xff] }
  0xfa   : > { %v379_v17 = vadd.f32 %v511_v15, %v370_v16  ;;  %v369_v18 = vld [vmem:[#allocation2] sm:$0xff] }
  0xfb   : > { %v378_v19 = vadd.f32 %v511_v15, %v369_v18 }
  0xfc   : > { %381 = vst.msk [vmem:[%s262_s30 + $0x8] sm:$0xff] %vm268_vm1, %v379_v17 }
  0xfd   : > { %380 = vst.msk [vmem:[%s262_s30] sm:$0xff] %vm268_vm1, %v378_v19 }
  0xfe PF: > { %s13_s14 = sadd.s32 1, %s588_s14   ;;  %s665_s12 = smov %s584_s13 }
  0xff   : > { %p10_p5 = scmp.ge.s32.totalorder %s13_s14, 6   ;;  %s666_s13 = smov %s668_s15 }
 0x101   :  { %12 = sbr.rel (!%p10_p5) target bundleno = 2 (0x2), region = 76 }

</bundles_post_ra>
